<compile_context>
chip_gen: v6e
topology: v6e:2x2x1
jax: 0.10.0
libtpu: 0.0.40
codegen_flags: <defaults>
</compile_context>

<pallas_src>
import jax
import jax.numpy as jnp
from jax.experimental import pallas as pl
from jax.experimental.pallas import tpu as pltpu


def _qfunc_kernel(obs_ref, act_ref, skill_ref,
                  w1o_ref, w1a_ref, w1s_ref, b1_ref,
                  w2_ref, b2_ref, w3_ref, b3_ref, out_ref):
    # Layer 1 with fused concat (three row-blocks of W1), f32 accumulation.
    h = jnp.dot(obs_ref[...], w1o_ref[...], preferred_element_type=jnp.float32)
    h = h + jnp.dot(act_ref[...], w1a_ref[...], preferred_element_type=jnp.float32)
    h = h + jnp.dot(skill_ref[...], w1s_ref[...], preferred_element_type=jnp.float32)
    h = jnp.maximum(h + b1_ref[...], 0.0)          # bias + ReLU in f32 (VPU)

    # Layer 2: Linear + ReLU (MXU in the streaming dtype, accumulate in f32).
    h = jnp.dot(h.astype(w2_ref.dtype), w2_ref[...],
                preferred_element_type=jnp.float32)
    h = jnp.maximum(h + b2_ref[...], 0.0)

    # Output layer (out_features == 1): VPU multiply + XLU lane reduction
    # instead of a 1-column MXU matmul.
    q = jnp.sum(h * w3_ref[...], axis=-1, keepdims=True) + b3_ref[...]
    out_ref[...] = q.astype(out_ref.dtype)


def mlp_q_function(obs, act, skill, params, *, compute_dtype=jnp.float32,
                   block_b=512):
    """Pallas-backed forward pass of MLPQFunction.

    obs:   [B, obs_dim], act: [B, act_dim], skill: [B, skill_dim]
    params: (w1 [Din,H1], b1 [1,H1], w2 [H1,H2], b2 [1,H2], w3 [H2,1], b3 [1,1])
    returns: [B] float32 Q-values (squeezed last dim).
    """
    w1, b1, w2, b2, w3, b3 = params
    B = obs.shape[0]
    do, da, ds = obs.shape[1], act.shape[1], skill.shape[1]
    H1, H2 = w1.shape[1], w2.shape[1]
    din = do + da + ds
    cd = jnp.dtype(compute_dtype)

    # Fuse the concat into layer 1 by splitting W1 row-wise (tiny slices,
    # done once in the wrapper).
    w1o = w1[:do].astype(cd)
    w1a = w1[do:do + da].astype(cd)
    w1s = w1[do + da:].astype(cd)
    w2c = w2.astype(cd)
    obs_c, act_c, skill_c = obs.astype(cd), act.astype(cd), skill.astype(cd)
    # Keep the small VPU-side tensors in f32 (v5e VPU has no bf16).
    b1f, b2f = b1.astype(jnp.float32), b2.astype(jnp.float32)
    w3_row = jnp.reshape(w3, (1, H2)).astype(jnp.float32)
    b3f = jnp.reshape(b3, (1, 1)).astype(jnp.float32)

    # Batch tiling: whole batch if it fits one tile, otherwise pipelined
    # block_b-row tiles (block_b % 8 == 0); a partial last tile is masked by
    # Pallas automatically.
    tb = B if B <= block_b else block_b
    grid = (pl.cdiv(B, tb),)

    def row_spec(d):          # streamed, one tile per grid step
        return pl.BlockSpec((tb, d), lambda i: (i, 0))

    def pinned(shape):        # fetched once, resident across the whole grid
        return pl.BlockSpec(shape, lambda i: (0, 0))

    flops = 2 * B * (din * H1 + H1 * H2 + H2)
    bytes_accessed = (
        B * din * cd.itemsize + B * 4                       # activations + out
        + (din * H1 + H1 * H2) * cd.itemsize                # streamed weights
        + (H1 + H2 + H2 + 1) * 4                            # biases + w3 row
    )

    q = pl.pallas_call(
        _qfunc_kernel,
        out_shape=jax.ShapeDtypeStruct((B, 1), jnp.float32),
        grid=grid,
        in_specs=[
            row_spec(do), row_spec(da), row_spec(ds),
            pinned((do, H1)), pinned((da, H1)), pinned((ds, H1)), pinned((1, H1)),
            pinned((H1, H2)), pinned((1, H2)),
            pinned((1, H2)), pinned((1, 1)),
        ],
        out_specs=row_spec(1),
        compiler_params=pltpu.CompilerParams(
            dimension_semantics=("parallel",)),
        cost_estimate=pl.CostEstimate(
            flops=flops, transcendentals=0, bytes_accessed=bytes_accessed),
    )(obs_c, act_c, skill_c, w1o, w1a, w1s, b1f, w2c, b2f, w3_row, b3f)
    return jnp.squeeze(q, -1)  # torch.squeeze(q, -1)


def init_params(key, obs_dim, act_dim, skill_dim, hidden_sizes):
    """Deterministic init mirroring nn.Linear default (uniform +/- 1/sqrt(fan_in)).

    Weights are stored as [in_features, out_features] so the kernel does x @ W.
    Biases are stored as [1, out_features] for clean broadcasting in VMEM.
    """
    sizes = [obs_dim + act_dim + skill_dim] + list(hidden_sizes) + [1]
    params = []
    for j in range(len(sizes) - 1):
        key, kw, kb = jax.random.split(key, 3)
        fan_in, fan_out = sizes[j], sizes[j + 1]
        bound = 1.0 / jnp.sqrt(jnp.float32(fan_in))
        w = jax.random.uniform(kw, (fan_in, fan_out), jnp.float32, -bound, bound)
        b = jax.random.uniform(kb, (1, fan_out), jnp.float32, -bound, bound)
        params += [w, b]
    return tuple(params)


if __name__ == "__main__":
    # Small shapes consistent with the module's forward.
    batch = 8
    obs_dim, act_dim, skill_dim = 12, 4, 8
    hidden_sizes = (32, 32)  # activation = ReLU

    key = jax.random.PRNGKey(0)
    key, ko, ka, ks, kp = jax.random.split(key, 5)
    obs = jax.random.normal(ko, (batch, obs_dim), jnp.float32)
    act = jax.random.normal(ka, (batch, act_dim), jnp.float32)
    skill = jax.random.normal(ks, (batch, skill_dim), jnp.float32)
    params = init_params(kp, obs_dim, act_dim, skill_dim, hidden_sizes)

    def reference(o, a, s):
        w1, b1, w2, b2, w3, b3 = params
        x = jnp.concatenate([o, a, s], axis=-1)
        h = jnp.maximum(x @ w1 + b1, 0.0)
        h = jnp.maximum(h @ w2 + b2, 0.0)
        return jnp.squeeze(h @ w3 + b3, -1)

    # 1) Small batch, f32 (single-tile path).
    q = jax.block_until_ready(mlp_q_function(obs, act, skill, params))
    q_ref = reference(obs, act, skill)
    assert q.shape == (batch,), q.shape
    assert jnp.allclose(q, q_ref, atol=1e-4, rtol=1e-4), \
        float(jnp.max(jnp.abs(q - q_ref)))

    # 2) Larger batch exercising the pipelined multi-tile (grid>1) path.
    big = 1024
    key, ko2, ka2, ks2 = jax.random.split(key, 4)
    obs_b = jax.random.normal(ko2, (big, obs_dim), jnp.float32)
    act_b = jax.random.normal(ka2, (big, act_dim), jnp.float32)
    skill_b = jax.random.normal(ks2, (big, skill_dim), jnp.float32)
    q_b = jax.block_until_ready(mlp_q_function(obs_b, act_b, skill_b, params))
    q_b_ref = reference(obs_b, act_b, skill_b)
    assert q_b.shape == (big,)
    assert jnp.allclose(q_b, q_b_ref, atol=1e-4, rtol=1e-4), \
        float(jnp.max(jnp.abs(q_b - q_b_ref)))

    # 3) bf16-streaming path (halves HBM read bytes); looser tolerance since
    #    inputs/W1/W2 are rounded to bf16 (accumulation stays f32).
    q_bf16 = jax.block_until_ready(
        mlp_q_function(obs_b, act_b, skill_b, params,
                       compute_dtype=jnp.bfloat16))
    assert jnp.allclose(q_bf16, q_b_ref, atol=1e-1, rtol=1e-1), \
        float(jnp.max(jnp.abs(q_bf16 - q_b_ref)))

    print("KERNEL_OK")
</pallas_src>

<mosaic_0001>
module attributes {stable_mosaic.version = 11 : i64} {
  func.func @_qfunc_kernel(%arg0: i32, %arg1: memref<8x12xf32, #tpu.memory_space<vmem>>, %arg2: memref<8x4xf32, #tpu.memory_space<vmem>>, %arg3: memref<8x8xf32, #tpu.memory_space<vmem>>, %arg4: memref<12x32xf32, #tpu.memory_space<vmem>>, %arg5: memref<4x32xf32, #tpu.memory_space<vmem>>, %arg6: memref<8x32xf32, #tpu.memory_space<vmem>>, %arg7: memref<1x32xf32, #tpu.memory_space<vmem>>, %arg8: memref<32x32xf32, #tpu.memory_space<vmem>>, %arg9: memref<1x32xf32, #tpu.memory_space<vmem>>, %arg10: memref<1x32xf32, #tpu.memory_space<vmem>>, %arg11: memref<1x1xf32, #tpu.memory_space<vmem>>, %arg12: memref<8x1xf32, #tpu.memory_space<vmem>>) attributes {dimension_semantics = [#tpu.dimension_semantics<parallel>], iteration_bounds = array<i64: 1>, scalar_prefetch = 0 : i64, scratch_operands = 0 : i64, tpu.core_type = #tpu.core_type<tc>, window_params = [{transform_indices = @transform_0, window_bounds = array<i64: 8, 12>}, {transform_indices = @transform_1, window_bounds = array<i64: 8, 4>}, {transform_indices = @transform_2, window_bounds = array<i64: 8, 8>}, {pipeline_mode = #tpu.pipeline_mode<synchronous>, transform_indices = @transform_3, window_bounds = array<i64: 12, 32>}, {pipeline_mode = #tpu.pipeline_mode<synchronous>, transform_indices = @transform_4, window_bounds = array<i64: 4, 32>}, {pipeline_mode = #tpu.pipeline_mode<synchronous>, transform_indices = @transform_5, window_bounds = array<i64: 8, 32>}, {pipeline_mode = #tpu.pipeline_mode<synchronous>, transform_indices = @transform_6, window_bounds = array<i64: 1, 32>}, {pipeline_mode = #tpu.pipeline_mode<synchronous>, transform_indices = @transform_7, window_bounds = array<i64: 32, 32>}, {pipeline_mode = #tpu.pipeline_mode<synchronous>, transform_indices = @transform_8, window_bounds = array<i64: 1, 32>}, {pipeline_mode = #tpu.pipeline_mode<synchronous>, transform_indices = @transform_9, window_bounds = array<i64: 1, 32>}, {pipeline_mode = #tpu.pipeline_mode<synchronous>, transform_indices = @transform_10, window_bounds = array<i64: 1, 1>}, {transform_indices = @transform_11, window_bounds = array<i64: 8, 1>}]} {
    %c0 = arith.constant 0 : index
    %c0_0 = arith.constant 0 : index
    %0 = vector.load %arg1[%c0, %c0_0] : memref<8x12xf32, #tpu.memory_space<vmem>>, vector<8x12xf32>
    %c0_1 = arith.constant 0 : index
    %c0_2 = arith.constant 0 : index
    %1 = vector.load %arg4[%c0_1, %c0_2] : memref<12x32xf32, #tpu.memory_space<vmem>>, vector<12x32xf32>
    %cst = arith.constant dense<0.000000e+00> : vector<8x32xf32>
    %2 = tpu.matmul %0, %1, %cst {dimension_numbers = #tpu.dot_dimension_numbers<[1], [0], [0], [1], [0, 0, 1, 1], [], []>} : vector<8x12xf32>, vector<12x32xf32>, vector<8x32xf32> -> vector<8x32xf32>
    %c0_3 = arith.constant 0 : index
    %c0_4 = arith.constant 0 : index
    %3 = vector.load %arg2[%c0_3, %c0_4] : memref<8x4xf32, #tpu.memory_space<vmem>>, vector<8x4xf32>
    %c0_5 = arith.constant 0 : index
    %c0_6 = arith.constant 0 : index
    %4 = vector.load %arg5[%c0_5, %c0_6] : memref<4x32xf32, #tpu.memory_space<vmem>>, vector<4x32xf32>
    %cst_7 = arith.constant dense<0.000000e+00> : vector<8x32xf32>
    %5 = tpu.matmul %3, %4, %cst_7 {dimension_numbers = #tpu.dot_dimension_numbers<[1], [0], [0], [1], [0, 0, 1, 1], [], []>} : vector<8x4xf32>, vector<4x32xf32>, vector<8x32xf32> -> vector<8x32xf32>
    %6 = arith.addf %2, %5 : vector<8x32xf32>
    %c0_8 = arith.constant 0 : index
    %c0_9 = arith.constant 0 : index
    %7 = vector.load %arg3[%c0_8, %c0_9] : memref<8x8xf32, #tpu.memory_space<vmem>>, vector<8x8xf32>
    %c0_10 = arith.constant 0 : index
    %c0_11 = arith.constant 0 : index
    %8 = vector.load %arg6[%c0_10, %c0_11] : memref<8x32xf32, #tpu.memory_space<vmem>>, vector<8x32xf32>
    %cst_12 = arith.constant dense<0.000000e+00> : vector<8x32xf32>
    %9 = tpu.matmul %7, %8, %cst_12 {dimension_numbers = #tpu.dot_dimension_numbers<[1], [0], [0], [1], [0, 0, 1, 1], [], []>} : vector<8x8xf32>, vector<8x32xf32>, vector<8x32xf32> -> vector<8x32xf32>
    %10 = arith.addf %6, %9 : vector<8x32xf32>
    %c0_13 = arith.constant 0 : index
    %c0_14 = arith.constant 0 : index
    %11 = vector.load %arg7[%c0_13, %c0_14] : memref<1x32xf32, #tpu.memory_space<vmem>>, vector<1x32xf32>
    %12 = vector.broadcast %11 : vector<1x32xf32> to vector<8x32xf32>
    %13 = arith.addf %10, %12 : vector<8x32xf32>
    %cst_15 = arith.constant 0.000000e+00 : f32
    %14 = vector.broadcast %cst_15 : f32 to vector<8x32xf32>
    %15 = arith.maximumf %13, %14 : vector<8x32xf32>
    %c0_16 = arith.constant 0 : index
    %c0_17 = arith.constant 0 : index
    %16 = vector.load %arg8[%c0_16, %c0_17] : memref<32x32xf32, #tpu.memory_space<vmem>>, vector<32x32xf32>
    %cst_18 = arith.constant dense<0.000000e+00> : vector<8x32xf32>
    %17 = tpu.matmul %15, %16, %cst_18 {dimension_numbers = #tpu.dot_dimension_numbers<[1], [0], [0], [1], [0, 0, 1, 1], [], []>} : vector<8x32xf32>, vector<32x32xf32>, vector<8x32xf32> -> vector<8x32xf32>
    %c0_19 = arith.constant 0 : index
    %c0_20 = arith.constant 0 : index
    %18 = vector.load %arg9[%c0_19, %c0_20] : memref<1x32xf32, #tpu.memory_space<vmem>>, vector<1x32xf32>
    %19 = vector.broadcast %18 : vector<1x32xf32> to vector<8x32xf32>
    %20 = arith.addf %17, %19 : vector<8x32xf32>
    %cst_21 = arith.constant 0.000000e+00 : f32
    %21 = vector.broadcast %cst_21 : f32 to vector<8x32xf32>
    %22 = arith.maximumf %20, %21 : vector<8x32xf32>
    %c0_22 = arith.constant 0 : index
    %c0_23 = arith.constant 0 : index
    %23 = vector.load %arg10[%c0_22, %c0_23] : memref<1x32xf32, #tpu.memory_space<vmem>>, vector<1x32xf32>
    %24 = vector.broadcast %23 : vector<1x32xf32> to vector<8x32xf32>
    %25 = arith.mulf %22, %24 : vector<8x32xf32>
    %cst_24 = arith.constant dense<0.000000e+00> : vector<8xf32>
    %26 = vector.multi_reduction <add>, %25, %cst_24 [1] : vector<8x32xf32> to vector<8xf32>
    %27 = vector.shape_cast %26 : vector<8xf32> to vector<8x1xf32>
    %c0_25 = arith.constant 0 : index
    %c0_26 = arith.constant 0 : index
    %28 = vector.load %arg11[%c0_25, %c0_26] : memref<1x1xf32, #tpu.memory_space<vmem>>, vector<1x1xf32>
    %29 = vector.broadcast %28 : vector<1x1xf32> to vector<8x1xf32>
    %30 = arith.addf %27, %29 : vector<8x1xf32>
    %c0_27 = arith.constant 0 : index
    %c0_28 = arith.constant 0 : index
    %31 = vector.load %arg12[%c0_27, %c0_28] : memref<8x1xf32, #tpu.memory_space<vmem>>, vector<8x1xf32>
    tpu.vector_store %arg12[%c0_27, %c0_28], %30 {strides = array<i32>} : memref<8x1xf32, #tpu.memory_space<vmem>>, vector<8x1xf32>,
    return
  }
  func.func @transform_0(%arg0: i32) -> (i32, i32) {
    %c0_i32 = arith.constant 0 : i32
    %c0_i32_0 = arith.constant 0 : i32
    return %arg0, %c0_i32 : i32, i32
  }
  func.func @transform_1(%arg0: i32) -> (i32, i32) {
    %c0_i32 = arith.constant 0 : i32
    %c0_i32_0 = arith.constant 0 : i32
    return %arg0, %c0_i32 : i32, i32
  }
  func.func @transform_2(%arg0: i32) -> (i32, i32) {
    %c0_i32 = arith.constant 0 : i32
    %c0_i32_0 = arith.constant 0 : i32
    return %arg0, %c0_i32 : i32, i32
  }
  func.func @transform_3(%arg0: i32) -> (i32, i32) {
    %c0_i32 = arith.constant 0 : i32
    %c0_i32_0 = arith.constant 0 : i32
    %c0_i32_1 = arith.constant 0 : i32
    return %c0_i32, %c0_i32_0 : i32, i32
  }
  func.func @transform_4(%arg0: i32) -> (i32, i32) {
    %c0_i32 = arith.constant 0 : i32
    %c0_i32_0 = arith.constant 0 : i32
    %c0_i32_1 = arith.constant 0 : i32
    return %c0_i32, %c0_i32_0 : i32, i32
  }
  func.func @transform_5(%arg0: i32) -> (i32, i32) {
    %c0_i32 = arith.constant 0 : i32
    %c0_i32_0 = arith.constant 0 : i32
    %c0_i32_1 = arith.constant 0 : i32
    return %c0_i32, %c0_i32_0 : i32, i32
  }
  func.func @transform_6(%arg0: i32) -> (i32, i32) {
    %c0_i32 = arith.constant 0 : i32
    %c0_i32_0 = arith.constant 0 : i32
    %c0_i32_1 = arith.constant 0 : i32
    return %c0_i32, %c0_i32_0 : i32, i32
  }
  func.func @transform_7(%arg0: i32) -> (i32, i32) {
    %c0_i32 = arith.constant 0 : i32
    %c0_i32_0 = arith.constant 0 : i32
    %c0_i32_1 = arith.constant 0 : i32
    return %c0_i32, %c0_i32_0 : i32, i32
  }
  func.func @transform_8(%arg0: i32) -> (i32, i32) {
    %c0_i32 = arith.constant 0 : i32
    %c0_i32_0 = arith.constant 0 : i32
    %c0_i32_1 = arith.constant 0 : i32
    return %c0_i32, %c0_i32_0 : i32, i32
  }
  func.func @transform_9(%arg0: i32) -> (i32, i32) {
    %c0_i32 = arith.constant 0 : i32
    %c0_i32_0 = arith.constant 0 : i32
    %c0_i32_1 = arith.constant 0 : i32
    return %c0_i32, %c0_i32_0 : i32, i32
  }
  func.func @transform_10(%arg0: i32) -> (i32, i32) {
    %c0_i32 = arith.constant 0 : i32
    %c0_i32_0 = arith.constant 0 : i32
    %c0_i32_1 = arith.constant 0 : i32
    return %c0_i32, %c0_i32_0 : i32, i32
  }
  func.func @transform_11(%arg0: i32) -> (i32, i32) {
    %c0_i32 = arith.constant 0 : i32
    %c0_i32_0 = arith.constant 0 : i32
    return %arg0, %c0_i32 : i32, i32
  }
}

</mosaic_0001>

<bundles_post_ra>
// kernel: tpu_custom_call.1
= control target key start
LH: loop header
LB: loop body
LE: loop exit
PB: predicated region body
PF: predicated region fallthrough
CT: control target
= control target key end

     0   :  { %s704_s0 = inlined_call_operand.hbm [shape: f32[8,12], index: 0, kind: input, shape index: {}]   ;;  %s705_s1 = inlined_call_operand.vmem [shape: f32[8,4], index: 1, kind: input, shape index: {}]   ;;  %s706_s2 = inlined_call_operand.hbm [shape: f32[8,8], index: 2, kind: input, shape index: {}]   ;;  %s707_s3 = inlined_call_operand.vmem [shape: f32[12,32], index: 3, kind: input, shape index: {}]   ;;  %s708_s4 = inlined_call_operand.vmem [shape: f32[4,32], index: 4, kind: input, shape index: {}]   ;;  %s709_s5 = inlined_call_operand.hbm [shape: f32[8,32], index: 5, kind: input, shape index: {}]   ;;  %s710_s6 = inlined_call_operand.vmem [shape: f32[1,32], index: 6, kind: input, shape index: {}]   ;;  %s711_s7 = inlined_call_operand.hbm [shape: f32[32,32], index: 7, kind: input, shape index: {}]   ;;  %s712_s8 = inlined_call_operand.vmem [shape: f32[1,32], index: 8, kind: input, shape index: {}]   ;;  %s713_s9 = inlined_call_operand.vmem [shape: f32[1,32], index: 9, kind: input, shape index: {}]   ;;  %s714_s10 = inlined_call_operand.<no memory space> [shape: f32[1,1], index: 10, kind: input, shape index: {}]   ;;  %s715_s11 = inlined_call_operand.vmem [shape: f32[8,1], index: 11, kind: output, shape index: {}]  }
   0x1   :  { %v16_v0 = vstv %s714_s10 }
   0x2   :  { %17 = vst [vmem:[#allocation2] sm:$0x1] %v16_v0 }
   0x3   :  { %18 = vsyncpa [#allocation4], 0 }
   0x4   :  { %19 = vsyncpa [#allocation6], 0 }
   0x5   :  { %20 = vsyncpa [#allocation9], 0  ;;  %s593_s19 = smov [#allocation5]   ;;  %s594_s21 = smov [#allocation3]  }
   0x6   :  { %s39_s20 = sshll.u32 %s593_s19, 4  ;;  %s27_s22 = sshll.u32 %s594_s21, 4  ;;  %s40_s20 = int_to_ptr.vmem [resolvable:$true] %s39_s20  ;;  %s28_s22 = int_to_ptr.vmem [resolvable:$true] %s27_s22 }
   0x7   :  { %s515_s23 = scalar_lea.vmem %s40_s20, 128  ;;  %p520_p1 = scmp.lt.s32.totalorder %s40_s20, %s40_s20 }
   0x8   :  { %p516_p0 = scmp.ne.s32.totalorder %s40_s20, %s515_s23  ;;  %p521_p2 = scmp.lt.s32.totalorder %s515_s23, %s515_s23 }
   0xa   :  { %p522_p3 = por %p521_p2, %p520_p1 }
   0xc   :  { %p523_p4 = pnand %p522_p3, %p516_p0 }
   0xe   :  { %526 = shalt.err (!%p523_p4)
}
   0xf   :  { %42 = dma.hbm_to_vmem [thread:$0]  %s706_s2, 128, %s40_s20, [#allocation6]  }
  0x10   :  { %s535_s10 = scalar_lea.vmem %s28_s22, 128  ;;  %p540_p6 = scmp.lt.s32.totalorder %s28_s22, %s28_s22 }
  0x11   :  { %p536_p5 = scmp.ne.s32.totalorder %s28_s22, %s535_s10  ;;  %p541_p7 = scmp.lt.s32.totalorder %s535_s10, %s535_s10 }
  0x13   :  { %p542_p8 = por %p541_p7, %p540_p6 }
  0x15   :  { %p543_p9 = pnand %p542_p8, %p536_p5 }
  0x17   :  { %546 = shalt.err (!%p543_p9)
}
  0x18   :  { %30 = dma.hbm_to_vmem [thread:$0]  %s704_s0, 128, %s28_s22, [#allocation4]  }
  0x19   :  { %s595_s28 = smov [#allocation7]   ;;  %s596_s30 = smov [#allocation8]  }
  0x1a   :  { %s53_s29 = sshll.u32 %s595_s28, 4  ;;  %s64_s12 = sshll.u32 %s596_s30, 4  ;;  %s54_s29 = int_to_ptr.vmem [resolvable:$true] %s53_s29  ;;  %s65_s12 = int_to_ptr.vmem [resolvable:$true] %s64_s12 }
  0x1b   :  { %s555_s13 = scalar_lea.vmem %s54_s29, 128  ;;  %p560_p11 = scmp.lt.s32.totalorder %s54_s29, %s54_s29 }
  0x1c   :  { %p556_p10 = scmp.ne.s32.totalorder %s54_s29, %s555_s13  ;;  %p561_p12 = scmp.lt.s32.totalorder %s555_s13, %s555_s13 }
  0x1e   :  { %p562_p13 = por %p561_p12, %p560_p11 }
  0x20   :  { %p563_p0 = pnand %p562_p13, %p556_p10 }
  0x22   :  { %566 = shalt.err (!%p563_p0)
}
  0x23   :  { %56 = dma.hbm_to_vmem [thread:$0]  %s709_s5, 128, %s54_s29, [#allocation6]  }
  0x24   :  { %s575_s15 = scalar_lea.vmem %s65_s12, 512  ;;  %p580_p2 = scmp.lt.s32.totalorder %s65_s12, %s65_s12 }
  0x25   :  { %p576_p1 = scmp.ne.s32.totalorder %s65_s12, %s575_s15  ;;  %p581_p3 = scmp.lt.s32.totalorder %s575_s15, %s575_s15 }
  0x27   :  { %p582_p4 = por %p581_p3, %p580_p2 }
  0x29   :  { %p583_p5 = pnand %p582_p4, %p576_p1 }
  0x2b   :  { %586 = shalt.err (!%p583_p5)
}
  0x2c   :  { %s597_s0 = smov 128   ;;  %s598_s16 = smov 8  }
  0x2d   :  { %70 = dma.hbm_to_vmem [thread:$0]  %s711_s7, 512, %s65_s12, [#allocation9], %s597_s0, %s597_s0, %s598_s16  }
  0x2e   :  { %587 = dma.done.wait [#allocation4], 128  }
  0x2f   :  { %588 = vsyncadd [#allocation4], 4294967168 }
  0x30   :  { %589 = dma.done.wait [#allocation6], 256  }
  0x31   :  { %590 = vsyncadd [#allocation6], 4294967040 }
  0x32   :  { %591 = dma.done.wait [#allocation9], 512  }
  0x33   :  { %592 = vsyncadd [#allocation9], 4294966784  ;;  %v599_v1 = vmov 0.0   ;;  %vm600_vm0 = vmmov 0   ;;  %vm98_vm1 = vcmask 1043456   ;;  %vm94_vm2 = vcmask 31744  }
  0x34   :  { %471 = vmatprep.subr.mxu0 %v599_v1  ;;  %473 = vmatprep.mubr.msk.f32.mxu0 %vm600_vm0, %v599_v1  ;;  %v93_v2 = vld [vmem:[%s708_s4] sm:$0xf]  ;;  %v91_v4 = vld [vmem:[%s707_s3 + $0x8] sm:$0xf]  ;;  %vm172_vm3 = vcmask 97280   ;;  %v250_v7 = vld [vmem:[#allocation7] sm:$0xff] }
  0x35   :  { %488 = vmatprep.subr.mxu1 %v599_v1  ;;  %496 = vmatprep.mubr.msk.f32.mxu1 %vm600_vm0, %v599_v1  ;;  %v92_v3 = vld [vmem:[%s705_s1] sm:$0xff]  ;;  %v249_v8 = vld [vmem:[#allocation5] sm:$0xff]  ;;  %vm251_vm4 = vcmask 64512   ;;  %v338_v9 = vld [vmem:[#allocation8 + $0x18] sm:$0xff]  ;;  %vm346_vm5 = vcmask 261120   ;;  %vm440_vm6 = vcmask 7168  }
  0x36   :  { %472 = vmatpush3.msk.msra.mxu0 %vm98_vm1, %v93_v2  ;;  %v90_v5 = vld [vmem:[%s707_s3] sm:$0xff]  ;;  %489 = vmatpush3.msra.mxu1 %v338_v9  ;;  %v337_v10 = vld [vmem:[#allocation8 + $0x10] sm:$0xff] }
  0x37   :  { %474 = vmatmul.mubr.msk.f32.vlgmr.msra.gmra.mxu0 %vm94_vm2, %v92_v3  ;;  %476 = vmatprep.subr.mxu0 %v599_v1  ;;  %v89_v6 = vld [vmem:[#allocation3] sm:$0xff]  ;;  %v335_v12 = vld [vmem:[#allocation8] sm:$0xff] }
  0x38   :  { %477 = vmatpush3.msk.msra.mxu0 %vm98_vm1, %v91_v4  ;;  %480 = vmatprep.mubr.msk.f32.mxu0 %vm600_vm0, %v599_v1  ;;  %v336_v11 = vld [vmem:[#allocation8 + $0x8] sm:$0xff]  ;;  %v454_v19 = vld [vmem:[%s710_s6] ss:$0 sm:$0xff] }
  0x39   :  { %478 = vmatprep.subr.mxu0 %v599_v1  ;;  %490 = vmatprep.subr.mxu1 %v599_v1  ;;  %v455_v24 = vld [vmem:[%s712_s8] ss:$0 sm:$0xff] }
  0x3a   :  { %479 = vmatpush3.msra.mxu0 %v90_v5  ;;  %491 = vmatpush3.msra.mxu1 %v337_v10  ;;  %v457_v28 = vld [vmem:[%s713_s9] ss:$0 sm:$0xff] }
  0x3b   :  { %481 = vmatmul.mubr.msk.f32.vlgmr.msra.gmra.mxu0 %vm172_vm3, %v89_v6  ;;  %483 = vmatprep.subr.mxu0 %v599_v1  ;;  %v458_v32 = vld [vmem:[#allocation2] ss:$0 sm:$0xff] }
  0x3c   :  { %484 = vmatpush3.msra.mxu0 %v250_v7  ;;  %485 = vmatprep.mubr.msk.f32.mxu0 %vm600_vm0, %v599_v1 }
  0x3d   :  { %492 = vmatprep.subr.mxu1 %v599_v1 }
  0x3e   :  { %493 = vmatpush3.msra.mxu1 %v336_v11 }
  0x3f   :  { %486 = vmatmul.mubr.msk.f32.vlgmr.msra.gmra.mxu0 %vm251_vm4, %v249_v8  ;;  %494 = vmatprep.subr.mxu1 %v599_v1 }
  0x40   :  { %495 = vmatpush3.msra.mxu1 %v335_v12 }
  0xf7   :  { %v168_v13 = vpop.f32.mrf.mxu0 }
  0xf9   :  { %v475_v14 = vpop.f32.mrf.mxu0 }
  0xfb   :  { %v245_v15 = vpop.f32.mrf.mxu0 }
  0xfc   :  { %v246_v17 = vadd.f32 %v245_v15, %v168_v13 }
  0xfd   :  { %v482_v16 = vpop.f32.mrf.mxu0 }
  0xff   :  { %v321_v18 = vpop.f32.mrf.mxu0 }
 0x100   :  { %v325_v20 = vadd.f32 %v321_v18, %v246_v17 }
 0x101   :  { %v487_v21 = vpop.f32.mrf.mxu0 }
 0x102   :  { %v333_v22 = vadd.f32 %v454_v19, %v325_v20 }
 0x104   :  { %v334_v23 = vmax.f32 %v333_v22, 0.0 }
 0x106   :  { %497 = vmatmul.mubr.msk.f32.vlgmr.msra.gmra.mxu1 %vm346_vm5, %v334_v23 }
 0x1c6   :  { %v416_v25 = vpop.f32.mrf.mxu1 }
 0x1c7   :  { %v417_v26 = vadd.f32 %v455_v24, %v416_v25 }
 0x1c8   :  { %v498_v27 = vpop.f32.mrf.mxu1 }
 0x1c9   :  { %v420_v29 = vmax.f32 %v417_v26, 0.0 }
 0x1cb   :  { %v428_v30 = vmul.f32 %v457_v28, %v420_v29 }
 0x1cd   :  { %v429_v31 = vsel %vm346_vm5, %v428_v30, 0.0 }
 0x1ce   :  { %430 = vadd.xlane.f32.xlu0 %v429_v31 }
 0x257   :  { %v431_v33 = vpop.xlane.xlu0 %430 }
 0x258   :  { %v439_v34 = vadd.f32 %v458_v32, %v431_v33 }
 0x25a   :  { %441 = vst.msk [vmem:[%s715_s11] sm:$0xff] %vm440_vm6, %v439_v34 }
 0x25b   :  { %446 = vsyncpa [#allocation4], 1 }
 0x25c   :  { %447 = vsyncpa [#allocation6], 1 }
 0x25d   :  { %448 = vsyncpa [#allocation9], 1 }

</bundles_post_ra>
